<compile_context>
chip_gen: v6e
topology: v6e:2x2x1
jax: 0.10.0
libtpu: 0.0.40
codegen_flags: <defaults>
</compile_context>

<pallas_src>
import jax
import jax.numpy as jnp
from jax.experimental import pallas as pl
from jax.experimental.pallas import tpu as pltpu


_LANE = 128                       # TPU lane width
_LANE_CANDIDATES = (1024, 512, 256, 128)
_TARGET_TILE_BYTES = 2 * 1024 * 1024   # ~2 MiB per buffer tile


def _identity_kernel(x_ref, o_ref):
    # Abstract forward() performs no computation; the faithful kernel is a
    # pass-through of the current tile (VMEM load -> VMEM store).
    o_ref[...] = x_ref[...]


def _identity_pallas_2d(x2d: jax.Array) -> jax.Array:
    """Streamed identity over a lane-dense (rows, lanes) slab."""
    rows, lanes = x2d.shape
    itemsize = jnp.dtype(x2d.dtype).itemsize

    # Row-tile sized for ~2 MiB per buffer; multiple of 8 to keep the
    # (8, 128) rule without relying on block==array for the sublane dim.
    tr_cap = max(8, (_TARGET_TILE_BYTES // (lanes * itemsize)) // 8 * 8)
    tr = rows if rows <= tr_cap else tr_cap

    return pl.pallas_call(
        _identity_kernel,
        out_shape=jax.ShapeDtypeStruct(x2d.shape, x2d.dtype),
        grid=(pl.cdiv(rows, tr),),
        in_specs=[pl.BlockSpec((tr, lanes), lambda i: (i, 0))],
        out_specs=pl.BlockSpec((tr, lanes), lambda i: (i, 0)),
        # Identity op: alias output onto the input buffer -> no extra HBM
        # allocation; the write stream collapses onto the existing buffer.
        input_output_aliases={0: 0},
        compiler_params=pltpu.CompilerParams(
            # "parallel" lets v7x shard the row axis across its 2 TensorCores;
            # no effect (but harmless) on single-TC v5e/v6e.
            dimension_semantics=("parallel",),
        ),
    )(x2d)


@jax.jit
def base_model_forward(x: jax.Array) -> jax.Array:
    """Pallas-backed 'forward' for BaseModel (identity, since forward is abstract).

    Args:
      x: NCHW tensor, e.g. (N, C, H, W).
    Returns:
      Tensor identical to x (same shape/dtype), produced via a Pallas kernel.
    """
    orig_shape = x.shape
    total = x.size

    # Pick the largest lane-dense last dim (multiple of 128) that divides the
    # element count; otherwise pad up to a multiple of 128 (identity op, so
    # padding is sliced off afterwards).
    lane = None
    for cand in _LANE_CANDIDATES:
        if total % cand == 0:
            lane = cand
            break
    flat = x.reshape(total)
    if lane is None:
        lane = _LANE
        pad = (-total) % lane
        flat = jnp.pad(flat, (0, pad))

    rows = flat.size // lane
    x2d = flat.reshape(rows, lane)

    out2d = _identity_pallas_2d(x2d)

    out_flat = out2d.reshape(rows * lane)[:total]
    return out_flat.reshape(orig_shape)


class BaseModelJAX:
    """Minimal JAX-side mirror of BaseModel's __init__ bookkeeping.

    No parameters are created (matching the PyTorch __init__, which only sets
    up config / name lists). forward() dispatches to the Pallas kernel.
    """

    def __init__(self):
        # Mirrors the bookkeeping attributes of the PyTorch BaseModel.__init__
        # (config / save-dir / GPU handling omitted: host-side, no kernel work).
        self.loss_names = []
        self.visual_names = []
        self.optimizers = []
        self.model_names = []
        self.image_paths = []
        self.metric = 0
        self.emaG = None
        self._input = None

    def set_input(self, x):
        self._input = x

    def forward(self):
        # Abstract in the reference -> identity pass-through here.
        return base_model_forward(self._input)


if __name__ == "__main__":
    key = jax.random.PRNGKey(0)
    # Small NCHW input consistent with an image-to-image base model.
    x = jax.random.normal(key, (2, 4, 16, 16), dtype=jnp.float32)

    model = BaseModelJAX()
    model.set_input(x)
    y = model.forward()
    y = jax.block_until_ready(y)

    # Correctness check: abstract forward is a no-op -> identity semantics.
    assert y.shape == x.shape and y.dtype == x.dtype
    assert bool(jnp.allclose(y, x))

    print("KERNEL_OK")
</pallas_src>

<mosaic_0001>
module attributes {stable_mosaic.version = 11 : i64} {
  func.func @_identity_kernel(%arg0: i32, %arg1: memref<2x1024xf32, #tpu.memory_space<vmem>>, %arg2: memref<2x1024xf32, #tpu.memory_space<vmem>>) attributes {dimension_semantics = [#tpu.dimension_semantics<parallel>], iteration_bounds = array<i64: 1>, scalar_prefetch = 0 : i64, scratch_operands = 0 : i64, tpu.core_type = #tpu.core_type<tc>, window_params = [{transform_indices = @transform_0, window_bounds = array<i64: 2, 1024>}, {transform_indices = @transform_1, window_bounds = array<i64: 2, 1024>}]} {
    %c0 = arith.constant 0 : index
    %c0_0 = arith.constant 0 : index
    %0 = vector.load %arg1[%c0, %c0_0] : memref<2x1024xf32, #tpu.memory_space<vmem>>, vector<2x1024xf32>
    %c0_1 = arith.constant 0 : index
    %c0_2 = arith.constant 0 : index
    %1 = vector.load %arg2[%c0_1, %c0_2] : memref<2x1024xf32, #tpu.memory_space<vmem>>, vector<2x1024xf32>
    tpu.vector_store %arg2[%c0_1, %c0_2], %0 {strides = array<i32>} : memref<2x1024xf32, #tpu.memory_space<vmem>>, vector<2x1024xf32>,
    return
  }
  func.func @transform_0(%arg0: i32) -> (i32, i32) {
    %c0_i32 = arith.constant 0 : i32
    %c0_i32_0 = arith.constant 0 : i32
    return %arg0, %c0_i32 : i32, i32
  }
  func.func @transform_1(%arg0: i32) -> (i32, i32) {
    %c0_i32 = arith.constant 0 : i32
    %c0_i32_0 = arith.constant 0 : i32
    return %arg0, %c0_i32 : i32, i32
  }
}

</mosaic_0001>

<bundles_post_ra>
// kernel: base_model_forward.1
= control target key start
LH: loop header
LB: loop body
LE: loop exit
PB: predicated region body
PF: predicated region fallthrough
CT: control target
= control target key end

     0   :  { %s38_s0 = inlined_call_operand.vmem [shape: f32[2,1024], index: 0, kind: input, shape index: {}, may-alias: {0,1}]   ;;  %s39_s1 = inlined_call_operand.vmem [shape: f32[2,1024], index: 1, kind: output, shape index: {}, may-alias: {0,1}]  }
   0x1   :  { %v8_v0 = vld [vmem:[%s38_s0] sm:$0xff]  ;;  %v9_v1 = vld [vmem:[%s38_s0 + $0x8] sm:$0xff] }
   0x2   :  { %10 = vst [vmem:[%s39_s1] sm:$0xff] %v8_v0  ;;  %11 = vst [vmem:[%s39_s1 + $0x8] sm:$0xff] %v9_v1 }

</bundles_post_ra>
